<compile_context>
chip_gen: v7x
topology: tpu7x:2x2x1
jax: 0.10.0
libtpu: 0.0.40
codegen_flags: <defaults>
</compile_context>

<pallas_src>
import jax
import jax.numpy as jnp
from jax import lax
from jax.experimental import pallas as pl
from jax.experimental.pallas import tpu as pltpu


# --------------------------------------------------------------------------------------
# Kernel
# --------------------------------------------------------------------------------------
def _flash_self_attention_kernel(xq_ref, xkv_ref, wq_ref, wk_ref, wv_ref, wp_ref, bp_ref,
                                 o_ref, q_sc, m_sc, l_sc, acc_sc):
    ki = pl.program_id(2)
    nkv = pl.num_programs(2)

    bblk, tq, c = xq_ref.shape
    tkv = xkv_ref.shape[1]

    @pl.when(ki == 0)
    def _init():
        # q projection (scale 1/sqrt(C) already folded into Wq), bf16 MXU, f32 accum.
        xq = xq_ref[...].astype(jnp.bfloat16).reshape(bblk * tq, c)
        q = jnp.dot(xq, wq_ref[...], preferred_element_type=jnp.float32)
        q_sc[...] = q.reshape(bblk, tq, c).astype(jnp.bfloat16)
        m_sc[...] = jnp.full(m_sc.shape, -jnp.inf, dtype=m_sc.dtype)
        l_sc[...] = jnp.zeros(l_sc.shape, dtype=l_sc.dtype)
        acc_sc[...] = jnp.zeros(acc_sc.shape, dtype=acc_sc.dtype)

    # k / v projections for this kv tile (bf16 operands, f32 accumulation).
    xkv = xkv_ref[...].astype(jnp.bfloat16).reshape(bblk * tkv, c)
    k = jnp.dot(xkv, wk_ref[...], preferred_element_type=jnp.float32)
    k = k.reshape(bblk, tkv, c).astype(jnp.bfloat16)
    v = jnp.dot(xkv, wv_ref[...], preferred_element_type=jnp.float32)
    v = v.reshape(bblk, tkv, c).astype(jnp.bfloat16)

    # Scores: contract last dims of q and k (no explicit K transpose / XLU vxpose).
    s = lax.dot_general(q_sc[...], k,
                        dimension_numbers=(((2,), (2,)), ((0,), (0,))),
                        preferred_element_type=jnp.float32)        # (bblk, tq, tkv) f32

    # Online softmax, normalization deferred past the PV matmul.
    m_prev = m_sc[...]
    m_new = jnp.maximum(m_prev, jnp.max(s, axis=-1, keepdims=True))
    alpha = jnp.exp(m_prev - m_new)                                # exp(-inf)=0 on step 0
    p = jnp.exp(s - m_new)
    l_sc[...] = alpha * l_sc[...] + jnp.sum(p, axis=-1, keepdims=True)
    pv = lax.dot_general(p.astype(jnp.bfloat16), v,
                         dimension_numbers=(((2,), (1,)), ((0,), (0,))),
                         preferred_element_type=jnp.float32)       # (bblk, tq, C) f32
    acc_sc[...] = alpha * acc_sc[...] + pv
    m_sc[...] = m_new

    @pl.when(ki == nkv - 1)
    def _finalize():
        # Deferred normalization: exact O(tq*C) divide (row sums >= 1, safe).
        out = (acc_sc[...] / l_sc[...]).astype(jnp.bfloat16).reshape(bblk * tq, c)
        y = jnp.dot(out, wp_ref[...], preferred_element_type=jnp.float32) + bp_ref[...]
        o_ref[...] = y.reshape(bblk, tq, c).astype(o_ref.dtype)


# --------------------------------------------------------------------------------------
# Hardware-aware sizing helpers
# --------------------------------------------------------------------------------------
def _vmem_capacity_bytes():
    try:
        cap = int(getattr(pltpu.get_tpu_info(), "vmem_capacity_bytes"))
        if cap > 0:
            return cap
    except Exception:
        pass
    return 64 * 1024 * 1024  # conservative (v7x per-core VMEM)


def _has_two_tensorcores():
    # Megacore grid-sharding only matters on v7x (2 TensorCores per chip).
    try:
        return "v7" in jax.devices()[0].device_kind.lower()
    except Exception:
        return False


def _tile_candidates(n, cap):
    # Tile must divide n and be a multiple of 8 (sublane) or equal n (full extent).
    cands = [d for d in range(1, n + 1)
             if n % d == 0 and d <= cap and (d == n or d % 8 == 0)]
    return sorted(cands, reverse=True) if cands else [n]


def _estimate_vmem_bytes(bblk, tq, tkv, C, x_bytes, out_bytes):
    # Double-buffered pipeline blocks (x_q, x_kv, out) + weights (x2 buffers).
    blocks = 2 * bblk * tq * C * x_bytes
    blocks += 2 * bblk * tkv * C * x_bytes
    blocks += 2 * bblk * tq * C * out_bytes
    blocks += 2 * (4 * C * C * 2 + C * 4)
    # Persistent scratch: q (bf16), m/l (f32), acc (f32).
    scratch = bblk * tq * C * 2 + 2 * bblk * tq * 4 + bblk * tq * C * 4
    # Transient tiles: scores f32 + exp f32 + bf16 copy; k/v (f32 + bf16); q f32.
    tmp = bblk * tq * tkv * (4 + 4 + 2)
    tmp += bblk * tkv * C * (4 + 2) * 2
    tmp += bblk * tq * C * 4
    return blocks + scratch + tmp


def _pick_tiling(B, N, C, x_bytes, out_bytes, budget, want_two_steps):
    tq_cands = _tile_candidates(N, 256)
    tkv_cands = _tile_candidates(N, 512)
    tq, tkv = tq_cands[-1], tkv_cands[-1]
    done = False
    for tq_c in tq_cands:                       # largest first
        for tkv_c in tkv_cands:
            if _estimate_vmem_bytes(1, tq_c, tkv_c, C, x_bytes, out_bytes) <= budget:
                tq, tkv, done = tq_c, tkv_c, True
                break
        if done:
            break
    bblk = 1
    for d in sorted((d for d in range(1, B + 1) if B % d == 0), reverse=True):
        if _estimate_vmem_bytes(d, tq, tkv, C, x_bytes, out_bytes) <= budget:
            bblk = d
            break
    # Only force >=2 parallel grid steps on v7x (2 TCs); single-TC chips take the
    # fattest block that fits to amortize per-step overhead.
    if want_two_steps and B > 1 and (B // bblk) * (N // tq) < 2:
        bblk = max(d for d in range(1, B // 2 + 1) if B % d == 0)
    return bblk, tq, tkv


# --------------------------------------------------------------------------------------
# Wrappers
# --------------------------------------------------------------------------------------
def _prepare_weights(qkv_w, proj_w, proj_b):
    """Hoistable weight prep: transpose, fold 1/sqrt(C) into Wq, cast to bf16."""
    C = proj_w.shape[0]
    scale = 1.0 / (float(C) ** 0.5)
    wq = (jnp.transpose(qkv_w[:C, :]) * jnp.float32(scale)).astype(jnp.bfloat16)
    wk = jnp.transpose(qkv_w[C:2 * C, :]).astype(jnp.bfloat16)
    wv = jnp.transpose(qkv_w[2 * C:, :]).astype(jnp.bfloat16)
    wp = jnp.transpose(proj_w).astype(jnp.bfloat16)
    bp = proj_b.reshape(1, C).astype(jnp.float32)
    return wq, wk, wv, wp, bp


def _self_attention_pallas(x, wq, wk, wv, wp, bp, out_dtype=None):
    B, N, C = x.shape
    out_dtype = x.dtype if out_dtype is None else out_dtype  # pass bf16 to halve writeback
    x_bytes = jnp.dtype(x.dtype).itemsize
    out_bytes = jnp.dtype(out_dtype).itemsize

    capacity = _vmem_capacity_bytes()
    compute_budget = int(capacity * 0.45)          # headroom for compiler temporaries
    vmem_limit = int(capacity * 0.8)

    bblk, tq, tkv = _pick_tiling(B, N, C, x_bytes, out_bytes, compute_budget,
                                 _has_two_tensorcores())
    grid = (B // bblk, N // tq, N // tkv)

    const = lambda b, qi, ki: (0, 0)

    return pl.pallas_call(
        _flash_self_attention_kernel,
        out_shape=jax.ShapeDtypeStruct((B, N, C), out_dtype),
        grid_spec=pltpu.PrefetchScalarGridSpec(
            num_scalar_prefetch=0,
            grid=grid,
            in_specs=[
                pl.BlockSpec((bblk, tq, C), lambda b, qi, ki: (b, qi, 0)),   # x (q rows)
                pl.BlockSpec((bblk, tkv, C), lambda b, qi, ki: (b, ki, 0)),  # x (kv rows)
                pl.BlockSpec((C, C), const),                                  # Wq (scaled)
                pl.BlockSpec((C, C), const),                                  # Wk
                pl.BlockSpec((C, C), const),                                  # Wv
                pl.BlockSpec((C, C), const),                                  # Wproj
                pl.BlockSpec((1, C), const),                                  # bias
            ],
            out_specs=pl.BlockSpec((bblk, tq, C), lambda b, qi, ki: (b, qi, 0)),
            scratch_shapes=[
                pltpu.VMEM((bblk, tq, C), jnp.bfloat16),   # q tile
                pltpu.VMEM((bblk, tq, 1), jnp.float32),    # running max
                pltpu.VMEM((bblk, tq, 1), jnp.float32),    # running sum
                pltpu.VMEM((bblk, tq, C), jnp.float32),    # unnormalized output acc
            ],
        ),
        compiler_params=pltpu.CompilerParams(
            dimension_semantics=("parallel", "parallel", "arbitrary"),
            vmem_limit_bytes=vmem_limit,
        ),
    )(x, x, wq, wk, wv, wp, bp)


def make_self_attention(qkv_w, proj_w, proj_b, out_dtype=None):
    """Prepare weights once, return a jitted forward closure (hot-path friendly)."""
    params = _prepare_weights(qkv_w, proj_w, proj_b)

    @jax.jit
    def fwd(x):
        return _self_attention_pallas(x, *params, out_dtype=out_dtype)

    return fwd


def self_attention(x, qkv_w, proj_w, proj_b):
    """One-shot convenience wrapper matching the PyTorch forward signature."""
    return _self_attention_pallas(x, *_prepare_weights(qkv_w, proj_w, proj_b))


def reference_self_attention(x, qkv_w, proj_w, proj_b):
    """Pure-JAX f32 reference mirroring the PyTorch forward."""
    B, N, C = x.shape
    qkv = x @ qkv_w.T
    q, k, v = qkv[..., :C], qkv[..., C:2 * C], qkv[..., 2 * C:]
    attn = (q @ jnp.swapaxes(k, -2, -1)) / (C ** 0.5)
    attn = jax.nn.softmax(attn, axis=-1)
    out = attn @ v
    return out @ proj_w.T + proj_b


if __name__ == "__main__":
    B, N, C = 2, 8, 32
    key = jax.random.PRNGKey(0)
    kx, kqkv, kpw, kpb = jax.random.split(key, 4)

    x = jax.random.normal(kx, (B, N, C), dtype=jnp.float32)
    qkv_w = jax.random.normal(kqkv, (3 * C, C), dtype=jnp.float32) * 0.05
    proj_w = jax.random.normal(kpw, (C, C), dtype=jnp.float32) * 0.05
    proj_b = jax.random.normal(kpb, (C,), dtype=jnp.float32) * 0.05

    attn_fn = make_self_attention(qkv_w, proj_w, proj_b)
    y = attn_fn(x)
    jax.block_until_ready(y)

    y_ref = reference_self_attention(x, qkv_w, proj_w, proj_b)
    max_err = float(jnp.max(jnp.abs(y - y_ref)))
    # bf16 matmul operands vs f32 reference -> loose tolerance.
    assert jnp.allclose(y, y_ref, atol=3e-2, rtol=3e-2), f"mismatch vs reference: {max_err}"

    print("KERNEL_OK")
</pallas_src>

<mosaic_0001>
module attributes {stable_mosaic.version = 11 : i64} {
  func.func @_flash_self_attention_kernel(%arg0: i32, %arg1: i32, %arg2: i32, %arg3: memref<2x8x32xf32, #tpu.memory_space<vmem>>, %arg4: memref<2x8x32xf32, #tpu.memory_space<vmem>>, %arg5: memref<32x32xbf16, #tpu.memory_space<vmem>>, %arg6: memref<32x32xbf16, #tpu.memory_space<vmem>>, %arg7: memref<32x32xbf16, #tpu.memory_space<vmem>>, %arg8: memref<32x32xbf16, #tpu.memory_space<vmem>>, %arg9: memref<1x32xf32, #tpu.memory_space<vmem>>, %arg10: memref<2x8x32xf32, #tpu.memory_space<vmem>>, %arg11: memref<2x8x32xbf16, #tpu.memory_space<vmem>>, %arg12: memref<2x8x1xf32, #tpu.memory_space<vmem>>, %arg13: memref<2x8x1xf32, #tpu.memory_space<vmem>>, %arg14: memref<2x8x32xf32, #tpu.memory_space<vmem>>) attributes {dimension_semantics = [#tpu.dimension_semantics<parallel>, #tpu.dimension_semantics<parallel>, #tpu.dimension_semantics<arbitrary>], iteration_bounds = array<i64: 1, 1, 1>, scalar_prefetch = 0 : i64, scratch_operands = 4 : i64, tpu.core_type = #tpu.core_type<tc>, window_params = [{transform_indices = @transform_0, window_bounds = array<i64: 2, 8, 32>}, {transform_indices = @transform_1, window_bounds = array<i64: 2, 8, 32>}, {pipeline_mode = #tpu.pipeline_mode<synchronous>, transform_indices = @transform_2, window_bounds = array<i64: 32, 32>}, {pipeline_mode = #tpu.pipeline_mode<synchronous>, transform_indices = @transform_3, window_bounds = array<i64: 32, 32>}, {pipeline_mode = #tpu.pipeline_mode<synchronous>, transform_indices = @transform_4, window_bounds = array<i64: 32, 32>}, {pipeline_mode = #tpu.pipeline_mode<synchronous>, transform_indices = @transform_5, window_bounds = array<i64: 32, 32>}, {pipeline_mode = #tpu.pipeline_mode<synchronous>, transform_indices = @transform_6, window_bounds = array<i64: 1, 32>}, {transform_indices = @transform_7, window_bounds = array<i64: 2, 8, 32>}]} {
    %c0_i32 = arith.constant 0 : i32
    %0 = arith.cmpi eq, %arg2, %c0_i32 : i32
    %1 = arith.extui %0 : i1 to i32
    %c0_i32_0 = arith.constant 0 : i32
    %2 = arith.cmpi ne, %1, %c0_i32_0 : i32
    scf.if %2 {
      %c0_35 = arith.constant 0 : index
      %c0_36 = arith.constant 0 : index
      %c0_37 = arith.constant 0 : index
      %42 = vector.load %arg3[%c0_35, %c0_36, %c0_37] : memref<2x8x32xf32, #tpu.memory_space<vmem>>, vector<2x8x32xf32>
      %43 = arith.truncf %42 : vector<2x8x32xf32> to vector<2x8x32xbf16>
      %44 = vector.shape_cast %43 : vector<2x8x32xbf16> to vector<16x32xbf16>
      %c0_38 = arith.constant 0 : index
      %c0_39 = arith.constant 0 : index
      %45 = vector.load %arg5[%c0_38, %c0_39] : memref<32x32xbf16, #tpu.memory_space<vmem>>, vector<32x32xbf16>
      %cst_40 = arith.constant dense<0.000000e+00> : vector<16x32xf32>
      %46 = tpu.matmul %44, %45, %cst_40 {dimension_numbers = #tpu.dot_dimension_numbers<[1], [0], [0], [1], [0, 0, 1, 1], [], []>} : vector<16x32xbf16>, vector<32x32xbf16>, vector<16x32xf32> -> vector<16x32xf32>
      %47 = vector.shape_cast %46 : vector<16x32xf32> to vector<2x8x32xf32>
      %48 = arith.truncf %47 : vector<2x8x32xf32> to vector<2x8x32xbf16>
      %c0_41 = arith.constant 0 : index
      %c0_42 = arith.constant 0 : index
      %c0_43 = arith.constant 0 : index
      %49 = vector.load %arg11[%c0_41, %c0_42, %c0_43] : memref<2x8x32xbf16, #tpu.memory_space<vmem>>, vector<2x8x32xbf16>
      tpu.vector_store %arg11[%c0_41, %c0_42, %c0_43], %48 {strides = array<i32>} : memref<2x8x32xbf16, #tpu.memory_space<vmem>>, vector<2x8x32xbf16>,
      %cst_44 = arith.constant 0xFF800000 : f32
      %50 = vector.broadcast %cst_44 : f32 to vector<2x8x1xf32>
      %c0_45 = arith.constant 0 : index
      %c0_46 = arith.constant 0 : index
      %c0_47 = arith.constant 0 : index
      %51 = vector.load %arg12[%c0_45, %c0_46, %c0_47] : memref<2x8x1xf32, #tpu.memory_space<vmem>>, vector<2x8x1xf32>
      tpu.vector_store %arg12[%c0_45, %c0_46, %c0_47], %50 {strides = array<i32>} : memref<2x8x1xf32, #tpu.memory_space<vmem>>, vector<2x8x1xf32>,
      %cst_48 = arith.constant 0.000000e+00 : f32
      %52 = vector.broadcast %cst_48 : f32 to vector<2x8x1xf32>
      %c0_49 = arith.constant 0 : index
      %c0_50 = arith.constant 0 : index
      %c0_51 = arith.constant 0 : index
      %53 = vector.load %arg13[%c0_49, %c0_50, %c0_51] : memref<2x8x1xf32, #tpu.memory_space<vmem>>, vector<2x8x1xf32>
      tpu.vector_store %arg13[%c0_49, %c0_50, %c0_51], %52 {strides = array<i32>} : memref<2x8x1xf32, #tpu.memory_space<vmem>>, vector<2x8x1xf32>,
      %cst_52 = arith.constant 0.000000e+00 : f32
      %54 = vector.broadcast %cst_52 : f32 to vector<2x8x32xf32>
      %c0_53 = arith.constant 0 : index
      %c0_54 = arith.constant 0 : index
      %c0_55 = arith.constant 0 : index
      %55 = vector.load %arg14[%c0_53, %c0_54, %c0_55] : memref<2x8x32xf32, #tpu.memory_space<vmem>>, vector<2x8x32xf32>
      tpu.vector_store %arg14[%c0_53, %c0_54, %c0_55], %54 {strides = array<i32>} : memref<2x8x32xf32, #tpu.memory_space<vmem>>, vector<2x8x32xf32>,
    } else {
    }
    %c0 = arith.constant 0 : index
    %c0_1 = arith.constant 0 : index
    %c0_2 = arith.constant 0 : index
    %3 = vector.load %arg4[%c0, %c0_1, %c0_2] : memref<2x8x32xf32, #tpu.memory_space<vmem>>, vector<2x8x32xf32>
    %4 = arith.truncf %3 : vector<2x8x32xf32> to vector<2x8x32xbf16>
    %5 = vector.shape_cast %4 : vector<2x8x32xbf16> to vector<16x32xbf16>
    %c0_3 = arith.constant 0 : index
    %c0_4 = arith.constant 0 : index
    %6 = vector.load %arg6[%c0_3, %c0_4] : memref<32x32xbf16, #tpu.memory_space<vmem>>, vector<32x32xbf16>
    %cst = arith.constant dense<0.000000e+00> : vector<16x32xf32>
    %7 = tpu.matmul %5, %6, %cst {dimension_numbers = #tpu.dot_dimension_numbers<[1], [0], [0], [1], [0, 0, 1, 1], [], []>} : vector<16x32xbf16>, vector<32x32xbf16>, vector<16x32xf32> -> vector<16x32xf32>
    %8 = vector.shape_cast %7 : vector<16x32xf32> to vector<2x8x32xf32>
    %9 = arith.truncf %8 : vector<2x8x32xf32> to vector<2x8x32xbf16>
    %c0_5 = arith.constant 0 : index
    %c0_6 = arith.constant 0 : index
    %10 = vector.load %arg7[%c0_5, %c0_6] : memref<32x32xbf16, #tpu.memory_space<vmem>>, vector<32x32xbf16>
    %cst_7 = arith.constant dense<0.000000e+00> : vector<16x32xf32>
    %11 = tpu.matmul %5, %10, %cst_7 {dimension_numbers = #tpu.dot_dimension_numbers<[1], [0], [0], [1], [0, 0, 1, 1], [], []>} : vector<16x32xbf16>, vector<32x32xbf16>, vector<16x32xf32> -> vector<16x32xf32>
    %12 = vector.shape_cast %11 : vector<16x32xf32> to vector<2x8x32xf32>
    %13 = arith.truncf %12 : vector<2x8x32xf32> to vector<2x8x32xbf16>
    %c0_8 = arith.constant 0 : index
    %c0_9 = arith.constant 0 : index
    %c0_10 = arith.constant 0 : index
    %14 = vector.load %arg11[%c0_8, %c0_9, %c0_10] : memref<2x8x32xbf16, #tpu.memory_space<vmem>>, vector<2x8x32xbf16>
    %cst_11 = arith.constant dense<0.000000e+00> : vector<2x8x8xf32>
    %15 = tpu.matmul %14, %9, %cst_11 {dimension_numbers = #tpu.dot_dimension_numbers<[2], [2], [1], [1], [0, 0, 0, 1, 1, 1], [0], [0]>} : vector<2x8x32xbf16>, vector<2x8x32xbf16>, vector<2x8x8xf32> -> vector<2x8x8xf32>
    %c0_12 = arith.constant 0 : index
    %c0_13 = arith.constant 0 : index
    %c0_14 = arith.constant 0 : index
    %16 = vector.load %arg12[%c0_12, %c0_13, %c0_14] : memref<2x8x1xf32, #tpu.memory_space<vmem>>, vector<2x8x1xf32>
    %cst_15 = arith.constant dense<0xFF800000> : vector<2x8xf32>
    %17 = vector.multi_reduction <maximumf>, %15, %cst_15 [2] : vector<2x8x8xf32> to vector<2x8xf32>
    %18 = vector.shape_cast %17 : vector<2x8xf32> to vector<2x8x1xf32>
    %19 = arith.maximumf %16, %18 : vector<2x8x1xf32>
    %20 = arith.subf %16, %19 : vector<2x8x1xf32>
    %21 = math.exp %20 : vector<2x8x1xf32>
    %22 = vector.broadcast %19 : vector<2x8x1xf32> to vector<2x8x8xf32>
    %23 = arith.subf %15, %22 : vector<2x8x8xf32>
    %24 = math.exp %23 : vector<2x8x8xf32>
    %c0_16 = arith.constant 0 : index
    %c0_17 = arith.constant 0 : index
    %c0_18 = arith.constant 0 : index
    %25 = vector.load %arg13[%c0_16, %c0_17, %c0_18] : memref<2x8x1xf32, #tpu.memory_space<vmem>>, vector<2x8x1xf32>
    %26 = arith.mulf %21, %25 : vector<2x8x1xf32>
    %cst_19 = arith.constant dense<0.000000e+00> : vector<2x8xf32>
    %27 = vector.multi_reduction <add>, %24, %cst_19 [2] : vector<2x8x8xf32> to vector<2x8xf32>
    %28 = vector.shape_cast %27 : vector<2x8xf32> to vector<2x8x1xf32>
    %29 = arith.addf %26, %28 : vector<2x8x1xf32>
    %c0_20 = arith.constant 0 : index
    %c0_21 = arith.constant 0 : index
    %c0_22 = arith.constant 0 : index
    %30 = vector.load %arg13[%c0_20, %c0_21, %c0_22] : memref<2x8x1xf32, #tpu.memory_space<vmem>>, vector<2x8x1xf32>
    tpu.vector_store %arg13[%c0_20, %c0_21, %c0_22], %29 {strides = array<i32>} : memref<2x8x1xf32, #tpu.memory_space<vmem>>, vector<2x8x1xf32>,
    %31 = arith.truncf %24 : vector<2x8x8xf32> to vector<2x8x8xbf16>
    %cst_23 = arith.constant dense<0.000000e+00> : vector<2x8x32xf32>
    %32 = tpu.matmul %31, %13, %cst_23 {dimension_numbers = #tpu.dot_dimension_numbers<[2], [1], [1], [2], [0, 0, 0, 1, 1, 2], [0], [0]>} : vector<2x8x8xbf16>, vector<2x8x32xbf16>, vector<2x8x32xf32> -> vector<2x8x32xf32>
    %c0_24 = arith.constant 0 : index
    %c0_25 = arith.constant 0 : index
    %c0_26 = arith.constant 0 : index
    %33 = vector.load %arg14[%c0_24, %c0_25, %c0_26] : memref<2x8x32xf32, #tpu.memory_space<vmem>>, vector<2x8x32xf32>
    %34 = vector.broadcast %21 : vector<2x8x1xf32> to vector<2x8x32xf32>
    %35 = arith.mulf %34, %33 : vector<2x8x32xf32>
    %36 = arith.addf %35, %32 : vector<2x8x32xf32>
    %c0_27 = arith.constant 0 : index
    %c0_28 = arith.constant 0 : index
    %c0_29 = arith.constant 0 : index
    %37 = vector.load %arg14[%c0_27, %c0_28, %c0_29] : memref<2x8x32xf32, #tpu.memory_space<vmem>>, vector<2x8x32xf32>
    tpu.vector_store %arg14[%c0_27, %c0_28, %c0_29], %36 {strides = array<i32>} : memref<2x8x32xf32, #tpu.memory_space<vmem>>, vector<2x8x32xf32>,
    %c0_30 = arith.constant 0 : index
    %c0_31 = arith.constant 0 : index
    %c0_32 = arith.constant 0 : index
    %38 = vector.load %arg12[%c0_30, %c0_31, %c0_32] : memref<2x8x1xf32, #tpu.memory_space<vmem>>, vector<2x8x1xf32>
    tpu.vector_store %arg12[%c0_30, %c0_31, %c0_32], %19 {strides = array<i32>} : memref<2x8x1xf32, #tpu.memory_space<vmem>>, vector<2x8x1xf32>,
    %c0_i32_33 = arith.constant 0 : i32
    %39 = arith.cmpi eq, %arg2, %c0_i32_33 : i32
    %40 = arith.extui %39 : i1 to i32
    %c0_i32_34 = arith.constant 0 : i32
    %41 = arith.cmpi ne, %40, %c0_i32_34 : i32
    scf.if %41 {
      %c0_35 = arith.constant 0 : index
      %c0_36 = arith.constant 0 : index
      %c0_37 = arith.constant 0 : index
      %42 = vector.load %arg14[%c0_35, %c0_36, %c0_37] : memref<2x8x32xf32, #tpu.memory_space<vmem>>, vector<2x8x32xf32>
      %c0_38 = arith.constant 0 : index
      %c0_39 = arith.constant 0 : index
      %c0_40 = arith.constant 0 : index
      %43 = vector.load %arg13[%c0_38, %c0_39, %c0_40] : memref<2x8x1xf32, #tpu.memory_space<vmem>>, vector<2x8x1xf32>
      %44 = vector.broadcast %43 : vector<2x8x1xf32> to vector<2x8x32xf32>
      %45 = arith.divf %42, %44 : vector<2x8x32xf32>
      %46 = arith.truncf %45 : vector<2x8x32xf32> to vector<2x8x32xbf16>
      %47 = vector.shape_cast %46 : vector<2x8x32xbf16> to vector<16x32xbf16>
      %c0_41 = arith.constant 0 : index
      %c0_42 = arith.constant 0 : index
      %48 = vector.load %arg8[%c0_41, %c0_42] : memref<32x32xbf16, #tpu.memory_space<vmem>>, vector<32x32xbf16>
      %cst_43 = arith.constant dense<0.000000e+00> : vector<16x32xf32>
      %49 = tpu.matmul %47, %48, %cst_43 {dimension_numbers = #tpu.dot_dimension_numbers<[1], [0], [0], [1], [0, 0, 1, 1], [], []>} : vector<16x32xbf16>, vector<32x32xbf16>, vector<16x32xf32> -> vector<16x32xf32>
      %c0_44 = arith.constant 0 : index
      %c0_45 = arith.constant 0 : index
      %50 = vector.load %arg9[%c0_44, %c0_45] : memref<1x32xf32, #tpu.memory_space<vmem>>, vector<1x32xf32>
      %51 = vector.broadcast %50 : vector<1x32xf32> to vector<16x32xf32>
      %52 = arith.addf %49, %51 : vector<16x32xf32>
      %53 = vector.shape_cast %52 : vector<16x32xf32> to vector<2x8x32xf32>
      %c0_46 = arith.constant 0 : index
      %c0_47 = arith.constant 0 : index
      %c0_48 = arith.constant 0 : index
      %54 = vector.load %arg10[%c0_46, %c0_47, %c0_48] : memref<2x8x32xf32, #tpu.memory_space<vmem>>, vector<2x8x32xf32>
      tpu.vector_store %arg10[%c0_46, %c0_47, %c0_48], %53 {strides = array<i32>} : memref<2x8x32xf32, #tpu.memory_space<vmem>>, vector<2x8x32xf32>,
    } else {
    }
    return
  }
  func.func @transform_0(%arg0: i32, %arg1: i32, %arg2: i32) -> (i32, i32, i32) {
    %c0_i32 = arith.constant 0 : i32
    %c0_i32_0 = arith.constant 0 : i32
    return %arg0, %arg1, %c0_i32 : i32, i32, i32
  }
  func.func @transform_1(%arg0: i32, %arg1: i32, %arg2: i32) -> (i32, i32, i32) {
    %c0_i32 = arith.constant 0 : i32
    %c0_i32_0 = arith.constant 0 : i32
    return %arg0, %arg2, %c0_i32 : i32, i32, i32
  }
  func.func @transform_2(%arg0: i32, %arg1: i32, %arg2: i32) -> (i32, i32) {
    %c0_i32 = arith.constant 0 : i32
    %c0_i32_0 = arith.constant 0 : i32
    %c0_i32_1 = arith.constant 0 : i32
    return %c0_i32, %c0_i32_0 : i32, i32
  }
  func.func @transform_3(%arg0: i32, %arg1: i32, %arg2: i32) -> (i32, i32) {
    %c0_i32 = arith.constant 0 : i32
    %c0_i32_0 = arith.constant 0 : i32
    %c0_i32_1 = arith.constant 0 : i32
    return %c0_i32, %c0_i32_0 : i32, i32
  }
  func.func @transform_4(%arg0: i32, %arg1: i32, %arg2: i32) -> (i32, i32) {
    %c0_i32 = arith.constant 0 : i32
    %c0_i32_0 = arith.constant 0 : i32
    %c0_i32_1 = arith.constant 0 : i32
    return %c0_i32, %c0_i32_0 : i32, i32
  }
  func.func @transform_5(%arg0: i32, %arg1: i32, %arg2: i32) -> (i32, i32) {
    %c0_i32 = arith.constant 0 : i32
    %c0_i32_0 = arith.constant 0 : i32
    %c0_i32_1 = arith.constant 0 : i32
    return %c0_i32, %c0_i32_0 : i32, i32
  }
  func.func @transform_6(%arg0: i32, %arg1: i32, %arg2: i32) -> (i32, i32) {
    %c0_i32 = arith.constant 0 : i32
    %c0_i32_0 = arith.constant 0 : i32
    %c0_i32_1 = arith.constant 0 : i32
    return %c0_i32, %c0_i32_0 : i32, i32
  }
  func.func @transform_7(%arg0: i32, %arg1: i32, %arg2: i32) -> (i32, i32, i32) {
    %c0_i32 = arith.constant 0 : i32
    %c0_i32_0 = arith.constant 0 : i32
    return %arg0, %arg1, %c0_i32 : i32, i32, i32
  }
}

</mosaic_0001>

<bundles_post_ra>
// kernel: fwd.1
= control target key start
LH: loop header
LB: loop body
LE: loop exit
PB: predicated region body
PF: predicated region fallthrough
CT: control target
= control target key end

     0   :  { %12 = vsyncpa [#allocation7], 0  ;;  %s1174_s0 = inlined_call_operand.hbm [shape: f32[2,8,32], index: 0, kind: input, shape index: {}, may-alias: {0,1}]   ;;  %s1175_s1 = inlined_call_operand.hbm [shape: f32[2,8,32], index: 1, kind: input, shape index: {}, may-alias: {0,1}]   ;;  %s1176_s2 = inlined_call_operand.hbm [shape: bf16[32,32], index: 2, kind: input, shape index: {}]   ;;  %s1177_s3 = inlined_call_operand.hbm [shape: bf16[32,32], index: 3, kind: input, shape index: {}]   ;;  %s1178_s4 = inlined_call_operand.hbm [shape: bf16[32,32], index: 4, kind: input, shape index: {}]   ;;  %s1179_s5 = inlined_call_operand.vmem [shape: bf16[32,32], index: 5, kind: input, shape index: {}]   ;;  %s1180_s6 = inlined_call_operand.vmem [shape: f32[1,32], index: 6, kind: input, shape index: {}]   ;;  %s1181_s7 = inlined_call_operand.hbm [shape: f32[2,8,32], index: 7, kind: output, shape index: {}]  }
   0x1   :  { %13 = vsyncpa [#allocation10], 0 }
   0x2   :  { %14 = vsyncpa [#allocation13], 0 }
   0x3   :  { %15 = vsyncpa [#allocation8], 0  ;;  %s961_s24 = smov [#allocation9]   ;;  %s821_s28 = scalar_lea.hbm %s1175_s1, 256 }
   0x4   :  { %s33_s25 = sshll.u32 %s961_s24, 4  ;;  %p822_p0 = scmp.ne.s32.totalorder %s1175_s1, %s821_s28  ;;  %s34_s25 = int_to_ptr.vmem [resolvable:$true] %s33_s25 }
   0x5   :  { %p825_p1 = scmp.lt.u32.totalorder %s821_s28, %s1175_s1 }
   0x7   :  { %p827_p2 = pnand %p825_p1, %p822_p0 }
   0x9   :  { %830 = shalt.err (!%p827_p2)
}
   0xa   :  { %s831_s10 = scalar_lea.vmem %s34_s25, 256  ;;  %p836_p4 = scmp.lt.s32.totalorder %s34_s25, %s34_s25 }
   0xb   :  { %p832_p3 = scmp.ne.s32.totalorder %s34_s25, %s831_s10  ;;  %p837_p5 = scmp.lt.s32.totalorder %s831_s10, %s831_s10 }
   0xd   :  { %p838_p6 = por %p837_p5, %p836_p4 }
   0xf   :  { %p839_p7 = pnand %p838_p6, %p832_p3 }
  0x11   :  { %842 = shalt.err (!%p839_p7)
}
  0x12   :  { %s962_s11 = smov 128   ;;  %s963_s12 = smov 8  }
  0x13   :  { %39 = dma.hbm_to_vmem [thread:$0]  %s1175_s1, 256, %s34_s25, [#allocation10], %s962_s11, %s962_s11, %s963_s12  }
  0x14   :  { %s964_s15 = smov [#allocation12]   ;;  %s965_s17 = smov [#allocation6]  }
  0x15   :  { %s57_s16 = sshll.u32 %s964_s15, 4  ;;  %s21_s18 = sshll.u32 %s965_s17, 4  ;;  %s58_s16 = int_to_ptr.vmem [resolvable:$true] %s57_s16  ;;  %s22_s18 = int_to_ptr.vmem [resolvable:$true] %s21_s18 }
  0x16   :  { %s843_s21 = scalar_lea.hbm %s1177_s3, 256 }
  0x17   :  { %p844_p8 = scmp.ne.s32.totalorder %s1177_s3, %s843_s21  ;;  %p847_p9 = scmp.lt.u32.totalorder %s843_s21, %s1177_s3 }
  0x19   :  { %p849_p10 = pnand %p847_p9, %p844_p8 }
  0x1b   :  { %852 = shalt.err (!%p849_p10)
}
  0x1c   :  { %s853_s1 = scalar_lea.vmem %s58_s16, 256  ;;  %p858_p12 = scmp.lt.s32.totalorder %s58_s16, %s58_s16 }
  0x1d   :  { %p854_p11 = scmp.ne.s32.totalorder %s58_s16, %s853_s1  ;;  %p859_p13 = scmp.lt.s32.totalorder %s853_s1, %s853_s1 }
  0x1f   :  { %p860_p0 = por %p859_p13, %p858_p12 }
  0x21   :  { %p861_p1 = pnand %p860_p0, %p854_p11 }
  0x23   :  { %864 = shalt.err (!%p861_p1)
}
  0x24   :  { %s966_s25 = smov 64   ;;  %s967_s27 = smov 4  }
  0x25   :  { %63 = dma.hbm_to_vmem [thread:$0]  %s1177_s3, 256, %s58_s16, [#allocation13], %s966_s25, %s966_s25, %s967_s27  }
  0x26   :  { %s865_s9 = scalar_lea.hbm %s1174_s0, 256 }
  0x27   :  { %p866_p2 = scmp.ne.s32.totalorder %s1174_s0, %s865_s9  ;;  %p869_p3 = scmp.lt.u32.totalorder %s865_s9, %s1174_s0 }
  0x29   :  { %p871_p4 = pnand %p869_p3, %p866_p2 }
  0x2b   :  { %874 = shalt.err (!%p871_p4)
}
  0x2c   :  { %s875_s17 = scalar_lea.vmem %s22_s18, 256  ;;  %p880_p6 = scmp.lt.s32.totalorder %s22_s18, %s22_s18 }
  0x2d   :  { %p876_p5 = scmp.ne.s32.totalorder %s22_s18, %s875_s17  ;;  %p881_p7 = scmp.lt.s32.totalorder %s875_s17, %s875_s17 }
  0x2f   :  { %p882_p8 = por %p881_p7, %p880_p6 }
  0x31   :  { %p883_p9 = pnand %p882_p8, %p876_p5 }
  0x33   :  { %886 = shalt.err (!%p883_p9)
}
  0x34   :  { %27 = dma.hbm_to_vmem [thread:$0]  %s1174_s0, 256, %s22_s18, [#allocation7], %s962_s11, %s962_s11, %s963_s12  }
  0x35   :  { %s968_s19 = smov [#allocation11]   ;;  %s969_s21 = smov [#allocation14]  }
  0x36   :  { %s45_s20 = sshll.u32 %s968_s19, 4  ;;  %s69_s22 = sshll.u32 %s969_s21, 4  ;;  %s46_s20 = int_to_ptr.vmem [resolvable:$true] %s45_s20  ;;  %s70_s22 = int_to_ptr.vmem [resolvable:$true] %s69_s22 }
  0x37   :  { %s887_s26 = scalar_lea.hbm %s1176_s2, 256 }
  0x38   :  { %p888_p10 = scmp.ne.s32.totalorder %s1176_s2, %s887_s26  ;;  %p891_p11 = scmp.lt.u32.totalorder %s887_s26, %s1176_s2 }
  0x3a   :  { %p893_p12 = pnand %p891_p11, %p888_p10 }
  0x3c   :  { %896 = shalt.err (!%p893_p12)
}
  0x3d   :  { %s897_s0 = scalar_lea.vmem %s46_s20, 256  ;;  %p902_p0 = scmp.lt.s32.totalorder %s46_s20, %s46_s20 }
  0x3e   :  { %p898_p13 = scmp.ne.s32.totalorder %s46_s20, %s897_s0  ;;  %p903_p1 = scmp.lt.s32.totalorder %s897_s0, %s897_s0 }
  0x40   :  { %p904_p2 = por %p903_p1, %p902_p0 }
  0x42   :  { %p905_p3 = pnand %p904_p2, %p898_p13 }
  0x44   :  { %908 = shalt.err (!%p905_p3)
}
  0x45   :  { %51 = dma.hbm_to_vmem [thread:$0]  %s1176_s2, 256, %s46_s20, [#allocation10], %s966_s25, %s966_s25, %s967_s27  }
  0x46   :  { %s909_s13 = scalar_lea.hbm %s1178_s4, 256 }
  0x47   :  { %p910_p4 = scmp.ne.s32.totalorder %s1178_s4, %s909_s13  ;;  %p913_p5 = scmp.lt.u32.totalorder %s909_s13, %s1178_s4 }
  0x49   :  { %p915_p6 = pnand %p913_p5, %p910_p4 }
  0x4b   :  { %918 = shalt.err (!%p915_p6)
}
  0x4c   :  { %s919_s16 = scalar_lea.vmem %s70_s22, 256  ;;  %p924_p8 = scmp.lt.s32.totalorder %s70_s22, %s70_s22 }
  0x4d   :  { %p920_p7 = scmp.ne.s32.totalorder %s70_s22, %s919_s16  ;;  %p925_p9 = scmp.lt.s32.totalorder %s919_s16, %s919_s16 }
  0x4f   :  { %p926_p10 = por %p925_p9, %p924_p8 }
  0x51   :  { %p927_p11 = pnand %p926_p10, %p920_p7 }
  0x53   :  { %930 = shalt.err (!%p927_p11)
}
  0x54   :  { %75 = dma.hbm_to_vmem [thread:$0]  %s1178_s4, 256, %s70_s22, [#allocation13], %s966_s25, %s966_s25, %s967_s27  }
  0x55   :  { %953 = dma.done.wait [#allocation7], 256  }
  0x56   :  { %954 = vsyncadd [#allocation7], 4294967040 }
  0x57   :  { %955 = dma.done.wait [#allocation10], 512  }
  0x58   :  { %956 = vsyncadd [#allocation10], 4294966784 }
  0x59   :  { %957 = dma.done.wait [#allocation13], 512  }
  0x5a   :  { %958 = vsyncadd [#allocation13], 4294966784  ;;  %vm125_vm0 = vcmask 261120   ;;  %v970_v0 = vmov 0.0   ;;  %vm971_vm1 = vmmov 0   ;;  %v801_v1 = vld [vmem:[#allocation11] sm:$0xff]  }
  0x5b   :  { %729 = vmatprep.subr.bf16.mxu0 %v970_v0  ;;  %737 = vmatprep.subr.bf16.mxu1 %v970_v0  ;;  %180 = vst.msk [vmem:[#allocation5] sm:$0xff] %vm125_vm0, %v970_v0  ;;  %181 = vst.msk [vmem:[#allocation5 + $0x8] sm:$0xff] %vm125_vm0, %v970_v0  ;;  %v802_v2 = vld [vmem:[#allocation12] sm:$0xff]   ;;  %v803_v3 = vld [vmem:[#allocation11 + $0x8] sm:$0xff]   ;;  %vm172_vm2 = vcmask 257024   ;;  %vm460_vm3 = vcmask 1043456  }
  0x5c   :  { %733 = vmatprep.mubr.msk.bf16.mxu0 %vm971_vm1, %v970_v0  ;;  %741 = vmatprep.mubr.msk.bf16.mxu1 %vm971_vm1, %v970_v0  ;;  %v804_v4 = vld [vmem:[#allocation12 + $0x8] sm:$0xff]   ;;  %v100_v5 = vld [vmem:[#allocation6] sm:$0xff]  ;;  %v101_v6 = vld [vmem:[#allocation6 + $0x8] sm:$0xff]  ;;  %vm175_vm4 = vcmask 7168   ;;  %v972_v37 = vmov -inf   ;;  %vm409_vm5 = vcmask 64512  }
  0x5d   :  { %730 = vmatpush3.bf16.msra.mxu0 %v801_v1  ;;  %738 = vmatpush3.bf16.msra.mxu1 %v802_v2  ;;  %v182_v7 = vld [vmem:[#allocation9] sm:$0xff]  ;;  %v706_v8 = vpack.c.bf16 %v101_v6, %v100_v5  ;;  %v183_v9 = vld [vmem:[#allocation9 + $0x8] sm:$0xff]  ;;  %v805_v11 = vld [vmem:[#allocation14] sm:$0xff]   ;;  %176 = vst.msk [vmem:[#allocation3] sm:$0xff] %vm175_vm4, %v972_v37  ;;  %v973_v48 = vmov 0   ;;  %s974_s22 = smov [#allocation15]  }
  0x5e   :  { %731 = vmatprep.subr.bf16.mxu0 %v970_v0  ;;  %739 = vmatprep.subr.bf16.mxu1 %v970_v0  ;;  %v707_v10 = vpack.c.bf16 %v183_v9, %v182_v7  ;;  %v806_v12 = vld [vmem:[#allocation14 + $0x8] sm:$0xff]   ;;  %177 = vst.msk [vmem:[#allocation3 + $0x8] sm:$0xff] %vm175_vm4, %v972_v37  ;;  %178 = vst.msk [vmem:[#allocation4] sm:$0xff] %vm175_vm4, %v970_v0  ;;  %s672_s23 = sshll.u32 %s974_s22, 4  ;;  %s673_s23 = int_to_ptr.vmem [resolvable:$true] %s672_s23 }
  0x5f   :  { %179 = vst.msk [vmem:[#allocation4 + $0x8] sm:$0xff] %vm175_vm4, %v970_v0  ;;  %799 = vset.pattern.permute.xlu1 %v973_v48  ;;  %800 = vset.pattern.permute.xlu0 %v973_v48  ;;  %s931_s24 = scalar_lea.vmem %s673_s23, 256  ;;  %p936_p13 = scmp.lt.s32.totalorder %s673_s23, %s673_s23 }
  0x60   :  { %p932_p12 = scmp.ne.s32.totalorder %s673_s23, %s931_s24  ;;  %p937_p0 = scmp.lt.s32.totalorder %s931_s24, %s931_s24 }
  0x61   :  { %732 = vmatpush3.bf16.msra.mxu0 %v803_v3  ;;  %740 = vmatpush3.bf16.msra.mxu1 %v804_v4 }
  0x62   :  { %745 = vmatprep.subr.bf16.mxu0 %v970_v0  ;;  %753 = vmatprep.subr.bf16.mxu1 %v970_v0  ;;  %p938_p1 = por %p937_p0, %p936_p13 }
  0x64   :  { %734 = vmatmul.mubr.msk.bf16.vlgmr.msra.gmra.mrb[0].mxu0 %vm125_vm0, %v706_v8  ;;  %742 = vmatmul.mubr.msk.bf16.vlgmr.msra.gmra.mrb[0].mxu1 %vm125_vm0, %v707_v10  ;;  %v407_v49 = vld [vmem:[#allocation3] sm:$0xff]  ;;  %p939_p2 = pnand %p938_p1, %p932_p12 }
  0x65   :  { %746 = vmatpush3.bf16.msra.mxu0 %v805_v11  ;;  %749 = vmatprep.mubr.msk.bf16.mxu0 %vm971_vm1, %v970_v0  ;;  %v408_v52 = vld [vmem:[#allocation3 + $0x8] sm:$0xff] }
  0x66   :  { %747 = vmatprep.subr.bf16.mxu0 %v970_v0  ;;  %755 = vmatprep.mubr.msk.bf16.mxu1 %vm971_vm1, %v970_v0 }
  0x69   :  { %748 = vmatpush3.bf16.msra.mxu0 %v806_v12 }
  0x6a   :  { %759 = vmatprep.subr.bf16.mxu0 %v970_v0 }
  0x6c   :  { %750 = vmatmul.mubr.msk.bf16.vlgmr.msra.gmra.mrb[4].mxu0 %vm125_vm0, %v707_v10  ;;  %v440_v10 = vld [vmem:[#allocation4] sm:$0xff] }
  0x6d   :  { %761 = vmatprep.mubr.msk.bf16.mxu0 %vm971_vm1, %v970_v0 }
 0x137   :  { %v163_v13 = vpop.f32.mrb[0].mxu0  ;;  %v245_v15 = vpop.f32.mrb[0].mxu1 }
 0x138   :  { %v170_v14 = vpack.c.bf16 %v163_v13, %v163_v13  ;;  %v735_v16 = vpop.f32.mrb[1].mxu0  ;;  %v252_v17 = vpack.c.bf16 %v245_v15, %v245_v15  ;;  %v743_v18 = vpop.f32.mrb[1].mxu1  ;;  %v441_v13 = vld [vmem:[#allocation4 + $0x8] sm:$0xff] }
 0x139   :  { %v166_v19 = vpop.f32.mrb[2].mxu0  ;;  %v248_v21 = vpop.f32.mrb[2].mxu1 }
 0x13a   :  { %173 = vst.msk [vmem:[#allocation2] sm:$0xf] %vm172_vm2, %v170_v14  ;;  %v171_v20 = vpack.c.bf16 %v166_v19, %v166_v19  ;;  %v736_v22 = vpop.f32.mrb[3].mxu0  ;;  %v319_v23 = vsel %vm125_vm0, %v252_v17, 0  ;;  %v253_v24 = vpack.c.bf16 %v248_v21, %v248_v21  ;;  %v744_v25 = vpop.f32.mrb[3].mxu1  ;;  %v808_v21 = vld [vmem:[%s1179_s5 + $0x8] sm:$0xff]  }
 0x13b   :  { %754 = vmatpush3.bf16.xpose.msra.mxu1 %v319_v23  ;;  %v550_v22 = vld [vmem:[#allocation5] sm:$0xff]  ;;  %v551_v25 = vld [vmem:[#allocation5 + $0x8] sm:$0xff] }
 0x13c   :  { %174 = vst.msk [vmem:[#allocation2 + $0x4] sm:$0xf] %vm172_vm2, %v171_v20  ;;  %v365_v26 = vsel %vm125_vm0, %v253_v24, 0  ;;  %765 = vmatprep.subr.bf16.mxu1 %v970_v0  ;;  %v807_v20 = vld [vmem:[%s1179_s5] sm:$0xff]  }
 0x13d   :  { %760 = vmatpush3.bf16.xpose.msra.mxu0 %v365_v26 }
 0x13e   :  { %771 = vmatprep.subr.bf16.mxu0 %v970_v0 }
 0x13f   :  { %v304_v27 = vpop.f32.mrb[4].mxu0 }
 0x140   :  { %v311_v28 = vpack.c.bf16 %v304_v27, %v304_v27  ;;  %v751_v29 = vpop.f32.mrb[5].mxu0 }
 0x141   :  { %v313_v30 = vld [vmem:[#allocation2] sm:$0xf]  ;;  %v307_v31 = vpop.f32.mrb[6].mxu0 }
 0x142   :  { %v462_v32 = vsel %vm460_vm3, %v311_v28, 0  ;;  %v312_v33 = vpack.c.bf16 %v307_v31, %v307_v31  ;;  %v752_v34 = vpop.f32.mrb[7].mxu0  ;;  %756 = vmatmul.mubr.msk.bf16.vlgmr.msra.gmra.mrb[4].mxu1 %vm125_vm0, %v313_v30 }
 0x143   :  { %v314_v35 = vld [vmem:[#allocation2 + $0x4] sm:$0xf]  ;;  %766 = vmatpush3.bf16.msra.mxu1 %v462_v32  ;;  %767 = vmatprep.mubr.msk.bf16.mxu1 %vm971_vm1, %v970_v0 }
 0x144   :  { %v508_v36 = vsel %vm460_vm3, %v312_v33, 0  ;;  %762 = vmatmul.mubr.msk.bf16.vlgmr.msra.gmra.mrb[8].mxu0 %vm125_vm0, %v314_v35  ;;  %777 = vmatprep.subr.bf16.mxu1 %v970_v0 }
 0x145   :  { %772 = vmatpush3.bf16.msra.mxu0 %v508_v36  ;;  %773 = vmatprep.mubr.msk.bf16.mxu0 %vm971_vm1, %v970_v0 }
 0x215   :  { %v355_v38 = vpop.f32.mrb[4].mxu1 }
 0x216   :  { %v757_v39 = vpop.f32.mrb[5].mxu1  ;;  %v410_v40 = vsel %vm409_vm5, %v355_v38, -inf }
 0x217   :  { %411 = vmax.xlane.f32.xlu0 %v410_v40  ;;  %v358_v41 = vpop.f32.mrb[6].mxu1  ;;  %v401_v42 = vpop.f32.mrb[8].mxu0 }
 0x218   :  { %v758_v43 = vpop.f32.mrb[7].mxu1  ;;  %v763_v44 = vpop.f32.mrb[9].mxu0  ;;  %v413_v47 = vsel %vm409_vm5, %v401_v42, -inf }
 0x219   :  { %v404_v45 = vpop.f32.mrb[10].mxu0 }
 0x21a   :  { %v764_v46 = vpop.f32.mrb[11].mxu0 }
 0x21b   :  { %414 = vmax.xlane.f32.xlu0 %v413_v47  ;;  %v701_v46 = vld [vmem:[%s1180_s6] ss:$0 sm:$0xff] }
 0x2a4   :  { %v412_v50 = vpop.xlane.xlu0 %411 }
 0x2a5   :  { %v416_v51 = vmax.f32 %v407_v49, %v412_v50 }
 0x2a7   :  { %v418_v53 = vsub.f32 %v407_v49, %v416_v51  ;;  %568 = vst.msk [vmem:[#allocation3] sm:$0xff] %vm175_vm4, %v416_v51  ;;  %426 = vperm.xlu1 %799, %v416_v51  }
 0x2a8   :  { %v415_v54 = vpop.xlane.xlu0 %414 }
 0x2a9   :  { %v417_v55 = vmax.f32 %v408_v52, %v415_v54  ;;  %v420_v7 = vmul.f32 1.442695, %v418_v53 }
 0x2ab   :  { %v419_v56 = vsub.f32 %v408_v52, %v417_v55  ;;  %569 = vst.msk [vmem:[#allocation3 + $0x8] sm:$0xff] %vm175_vm4, %v417_v55  ;;  %431 = vperm.xlu1 %799, %v417_v55  }
 0x2ad   :  { %v422_v6 = vmul.f32 1.442695, %v419_v56 }
 0x326   :  { %v427_v57 = vpop.permute.xlu1 %426 }
 0x327   :  { %v434_v58 = vsub.f32 %v355_v38, %v427_v57 }
 0x329   :  { %v436_v59 = vmul.f32 1.442695, %v434_v58 }
 0x32a   :  { %v432_v60 = vpop.permute.xlu1 %431 }
 0x32b   :  { %809 = vpow2.f32 %v436_v59  ;;  %v435_v61 = vsub.f32 %v401_v42, %v432_v60 }
 0x32d   :  { %v438_v62 = vmul.f32 1.442695, %v435_v61 }
 0x32f   :  { %811 = vpow2.f32 %v438_v62 }
 0x330   :  { %813 = vpow2.f32 %v422_v6 }
 0x331   :  { %815 = vpow2.f32 %v420_v7 }
 0x335   :  { %v810_v63 = vpop.eup %809 }
 0x336   :  { %v444_v1 = vsel %vm409_vm5, %v810_v63, 0.0  ;;  %v455_v2 = vpack.c.bf16 %v810_v63, %v810_v63 }
 0x337   :  { %445 = vadd.xlane.f32.xlu0 %v444_v1 }
 0x338   :  { %768 = vmatmul.mubr.msk.bf16.vlgmr.msra.gmra.mrb[8].mxu1 %vm409_vm5, %v455_v2 }
 0x339   :  { %v812_v3 = vpop.eup %811  ;;  %781 = vmatprep.mubr.msk.bf16.mxu1 %vm971_vm1, %v970_v0  ;;  %778 = vmatpush3.bf16.msra.mxu1 %v807_v20 }
 0x33a   :  { %v447_v4 = vsel %vm409_vm5, %v812_v3, 0.0  ;;  %v456_v5 = vpack.c.bf16 %v812_v3, %v812_v3  ;;  %v814_v8 = vpop.eup %813  ;;  %779 = vmatprep.subr.bf16.mxu1 %v970_v0 }
 0x33b   :  { %448 = vadd.xlane.f32.xlu1 %v447_v4  ;;  %v816_v9 = vpop.eup %815  ;;  %v443_v15 = vmul.f32 %v814_v8, %v441_v13 }
 0x33c   :  { %774 = vmatmul.mubr.msk.bf16.vlgmr.msra.gmra.mrb[12].mxu0 %vm409_vm5, %v456_v5  ;;  %v442_v11 = vmul.f32 %v816_v9, %v440_v10 }
 0x33d   :  { %780 = vmatpush3.bf16.msra.mxu1 %v808_v21 }
 0x34c   :  { %559 = vperm.xlu1 %799, %v814_v8  }
 0x34d   :  { %554 = vperm.xlu0 %800, %v816_v9  }
 0x3c4   :  { %v446_v12 = vpop.xlane.xlu0 %445 }
 0x3c5   :  { %v450_v14 = vadd.f32 %v446_v12, %v442_v11 }
 0x3c7   :  { %453 = vst.msk [vmem:[#allocation4] sm:$0xff] %vm175_vm4, %v450_v14 }
 0x3c8   :  { %v449_v16 = vpop.xlane.xlu1 %448 }
 0x3c9   :  { %v451_v17 = vadd.f32 %v449_v16, %v443_v15 }
 0x3cb   :  { %454 = vst.msk [vmem:[#allocation4 + $0x8] sm:$0xff] %vm175_vm4, %v451_v17 }
 0x3cc   :  { %v555_v23 = vpop.permute.xlu0 %554  ;;  %v560_v26 = vpop.permute.xlu1 %559 }
 0x3cd   :  { %v562_v24 = vmul.f32 %v555_v23, %v550_v22  ;;  %v563_v31 = vmul.f32 %v560_v26, %v551_v25 }
 0x3ce   :  { %v575_v18 = vld [vmem:[#allocation4] sm:$0xff] }
 0x3cf   :  { %579 = vperm.xlu0 %800, %v575_v18  }
 0x3d2   :  { %v576_v19 = vld [vmem:[#allocation4 + $0x8] sm:$0xff] }
 0x3d3   :  { %584 = vperm.xlu0 %800, %v576_v19  }
 0x40b   :  { %v498_v27 = vpop.f32.mrb[8].mxu1 }
 0x40c   :  { %v564_v28 = vadd.f32 %v562_v24, %v498_v27  ;;  %v769_v29 = vpop.f32.mrb[9].mxu1 }
 0x40d   :  { %v501_v30 = vpop.f32.mrb[10].mxu1 }
 0x40e   :  { %566 = vst.msk [vmem:[#allocation5] sm:$0xff] %vm125_vm0, %v564_v28  ;;  %v770_v32 = vpop.f32.mrb[11].mxu1 }
 0x40f   :  { %v544_v33 = vpop.f32.mrb[12].mxu0 }
 0x410   :  { %v565_v0 = vadd.f32 %v563_v31, %v544_v33  ;;  %v775_v34 = vpop.f32.mrb[13].mxu0 }
 0x411   :  { %v547_v35 = vpop.f32.mrb[14].mxu0 }
 0x412   :  { %567 = vst.msk [vmem:[#allocation5 + $0x8] sm:$0xff] %vm125_vm0, %v565_v0  ;;  %v776_v36 = vpop.f32.mrb[15].mxu0 }
 0x415   :  { %v573_v41 = vld [vmem:[#allocation5] sm:$0xff] }
 0x419   :  { %v574_v42 = vld [vmem:[#allocation5 + $0x8] sm:$0xff] }
 0x44e   :  { %v580_v37 = vpop.permute.xlu0 %579 }
 0x44f   :  { %817 = vrcp.f32 %v580_v37 }
 0x452   :  { %v585_v38 = vpop.permute.xlu0 %584 }
 0x453   :  { %819 = vrcp.f32 %v585_v38 }
 0x459   :  { %v818_v39 = vpop.eup %817 }
 0x45a   :  { %v588_v43 = vmul.f32 %v818_v39, %v573_v41 }
 0x45d   :  { %v820_v40 = vpop.eup %819 }
 0x45e   :  { %v590_v44 = vmul.f32 %v820_v40, %v574_v42 }
 0x460   :  { %v708_v45 = vpack.c.bf16 %v590_v44, %v588_v43 }
 0x462   :  { %782 = vmatmul.mubr.msk.bf16.vlgmr.msra.gmra.mrb[12].mxu1 %vm125_vm0, %v708_v45 }
 0x535   :  { %v658_v47 = vpop.f32.mrb[12].mxu1 }
 0x536   :  { %v659_v48 = vadd.f32 %v701_v46, %v658_v47  ;;  %v783_v49 = vpop.f32.mrb[13].mxu1 }
 0x537   :  { %v661_v50 = vpop.f32.mrb[14].mxu1 }
 0x538   :  { %665 = vst.msk [vmem:[#allocation15] sm:$0xff] %vm125_vm0, %v659_v48  ;;  %v662_v51 = vadd.f32 %v701_v46, %v661_v50  ;;  %v784_v52 = vpop.f32.mrb[15].mxu1 }
 0x53a   :  { %666 = vst.msk [vmem:[#allocation15 + $0x8] sm:$0xff] %vm125_vm0, %v662_v51 }
 0x53b   :  { %942 = shalt.err (!%p939_p2)
}
 0x53c   :  { %s943_s1 = scalar_lea.hbm %s1181_s7, 256 }
 0x53d   :  { %p944_p3 = scmp.ne.s32.totalorder %s1181_s7, %s943_s1  ;;  %p947_p4 = scmp.lt.u32.totalorder %s943_s1, %s1181_s7 }
 0x53f   :  { %p949_p5 = pnand %p947_p4, %p944_p3 }
 0x541   :  { %952 = shalt.err (!%p949_p5)
}
 0x542   :  { %678 = dma.vmem_to_hbm [thread:$0]  %s673_s23, 256, %s1181_s7, [#allocation8], %s962_s11, %s962_s11, %s963_s12  }
 0x543   :  { %959 = dma.done.wait [#allocation8], 256  }
 0x544   :  { %960 = vsyncadd [#allocation8], 4294967040 }
 0x545   :  { %682 = vsyncpa [#allocation7], 1 }
 0x546   :  { %683 = vsyncpa [#allocation10], 1 }
 0x547   :  { %684 = vsyncpa [#allocation13], 1 }
 0x548   :  { %685 = vsyncpa [#allocation8], 1 }

</bundles_post_ra>
